<compile_context>
chip_gen: v5e
topology: v5e:2x2
jax: 0.10.0
libtpu: 0.0.40
codegen_flags: <defaults>
</compile_context>

<pallas_src>
import jax
import jax.numpy as jnp
from jax.experimental import pallas as pl
from jax.experimental.pallas import tpu as pltpu

# --- module hyper-parameters (from lpfs.__init__ / lpfs_pp defaults) ---------
ALPHA = 10.0
TAU = 2.0
INIT_VAL = 1.0
EPSILON_INIT = 0.1
EPSILON_UPDATE_FREQ = 100
EPSILON_DECAY = 0.9978


def _scale_kernel(g_ref, x_ref, o_ref):
    """o = x * g for one (tb, tn) tile.

    g_ref : VMEM (1,  tn)  -> gate, pre-broadcast over the embedding dim
    x_ref : VMEM (tb, tn)  -> lane-dense view of the input
    o_ref : VMEM (tb, tn)
    """
    o_ref[...] = (x_ref[...] * g_ref[...]).astype(o_ref.dtype)


def _pick_tile(dim, align, max_tile):
    """Largest tile <= max_tile that is a multiple of `align` and divides `dim`.

    Falls back to the full extent when `dim` is not a multiple of `align`
    (BlockSpec then uses the whole-array dim, which is always legal)."""
    if dim % align != 0 or dim <= align:
        return dim
    t = min(max_tile, dim)
    t -= t % align
    while dim % t != 0:
        t -= align
    return t


def _lpfs_gate(gate_param, epsilon):
    """lpfs_pp(x, epsilon) from the PyTorch module, in plain JAX (tiny (F,1))."""
    p = gate_param.astype(jnp.float32)
    p2 = p * p
    g1 = p2 / (p2 + epsilon)
    g2 = ALPHA * (epsilon ** (1.0 / TAU)) * jnp.arctan(p)
    return jnp.where(p > 0.0, g2 + g1, g2 - g1) / INIT_VAL


def lpfs_forward(x, gate_param, epsilon, current_step):
    """Mirrors lpfs.forward(x, current_epoch, current_step, raw_data).

    Returns (x * g, updated_epsilon).  `epsilon` is Python-side module state,
    mutated exactly like the PyTorch module mutates self.epsilon.
    """
    # TODO(synk): epsilon update is module-state mutation; it stays a Python
    # branch and must remain outside jit (as in the original module).
    if current_step % EPSILON_UPDATE_FREQ == 0:
        epsilon = epsilon * EPSILON_DECAY

    B, F, E = x.shape
    N = F * E

    # Gate: computed once in the wrapper, pre-broadcast over E so the kernel
    # sees a lane-dense (1, F*E) row and does nothing but multiply.
    g = _lpfs_gate(gate_param, epsilon)                               # (F, 1)
    g_row = jnp.broadcast_to(g.reshape(F, 1), (F, E)).reshape(1, N)   # (1, F*E)

    x2 = x.reshape(B, N)   # contiguous reshape: free

    tb = _pick_tile(B, 8, 256)      # sublane-aligned row tile
    tn = _pick_tile(N, 128, 2048)   # lane-dense (multiple of 128) col tile
    grid = (B // tb, N // tn)

    nbytes = jnp.dtype(x.dtype).itemsize
    cost = pl.CostEstimate(
        flops=B * N,
        transcendentals=0,
        bytes_accessed=2 * B * N * nbytes + N * 4,
    )

    out2 = pl.pallas_call(
        _scale_kernel,
        out_shape=jax.ShapeDtypeStruct((B, N), x.dtype),
        grid=grid,
        in_specs=[
            pl.BlockSpec((1, tn), lambda i, j: (0, j)),    # gate row
            pl.BlockSpec((tb, tn), lambda i, j: (i, j)),   # x tile
        ],
        out_specs=pl.BlockSpec((tb, tn), lambda i, j: (i, j)),
        compiler_params=pltpu.CompilerParams(
            dimension_semantics=("parallel", "parallel"),
        ),
        cost_estimate=cost,
    )(g_row, x2)

    return out2.reshape(B, F, E), epsilon


def lpfs_reference(x, gate_param, epsilon, current_step):
    """Pure-JAX reference matching the PyTorch forward."""
    if current_step % EPSILON_UPDATE_FREQ == 0:
        epsilon = epsilon * EPSILON_DECAY
    p = gate_param
    g1 = p * p / (p * p + epsilon)
    g2 = ALPHA * (epsilon ** (1.0 / TAU)) * jnp.arctan(p)
    g = jnp.where(p > 0, g2 + g1, g2 - g1) / INIT_VAL
    return x * g.reshape(1, -1, 1)


if __name__ == "__main__":
    key = jax.random.PRNGKey(0)

    # ---- case 1: shapes/params exactly as the module implies ---------------
    # x is (batch, feature_num, embedding_dim); parameter init is ones(F, 1).
    B, F, E = 2, 4, 16
    k1, k2, k3 = jax.random.split(key, 3)
    x = jax.random.normal(k1, (B, F, E), dtype=jnp.float32)
    gate_param = jnp.ones((F, 1), dtype=jnp.float32)

    current_step = 0
    out, new_eps = lpfs_forward(x, gate_param, EPSILON_INIT, current_step)
    out = jax.block_until_ready(out)

    ref = lpfs_reference(x, gate_param, EPSILON_INIT, current_step)
    assert out.shape == x.shape and out.dtype == x.dtype
    assert jnp.allclose(out, ref, rtol=1e-5, atol=1e-5), "mismatch vs reference (case 1)"

    # ---- case 2: random gate (covers the x <= 0 branch) + lane-dense path --
    B2, F2, E2 = 8, 16, 16   # F*E = 256 -> multiple of 128, B multiple of 8
    x2 = jax.random.normal(k2, (B2, F2, E2), dtype=jnp.float32)
    gate2 = jax.random.normal(k3, (F2, 1), dtype=jnp.float32)

    out2, _ = lpfs_forward(x2, gate2, EPSILON_INIT, current_step=1)
    out2 = jax.block_until_ready(out2)
    ref2 = lpfs_reference(x2, gate2, EPSILON_INIT, current_step=1)
    assert jnp.allclose(out2, ref2, rtol=1e-5, atol=1e-5), "mismatch vs reference (case 2)"

    print("KERNEL_OK")
</pallas_src>

<mosaic_0001>
module attributes {stable_mosaic.version = 11 : i64} {
  func.func @_scale_kernel(%arg0: i32, %arg1: i32, %arg2: memref<1x64xf32, #tpu.memory_space<vmem>>, %arg3: memref<2x64xf32, #tpu.memory_space<vmem>>, %arg4: memref<2x64xf32, #tpu.memory_space<vmem>>) attributes {dimension_semantics = [#tpu.dimension_semantics<parallel>, #tpu.dimension_semantics<parallel>], iteration_bounds = array<i64: 1, 1>, scalar_prefetch = 0 : i64, scratch_operands = 0 : i64, tpu.core_type = #tpu.core_type<tc>, window_params = [{transform_indices = @transform_0, window_bounds = array<i64: 1, 64>}, {transform_indices = @transform_1, window_bounds = array<i64: 2, 64>}, {transform_indices = @transform_2, window_bounds = array<i64: 2, 64>}]} {
    %c0 = arith.constant 0 : index
    %c0_0 = arith.constant 0 : index
    %0 = vector.load %arg3[%c0, %c0_0] : memref<2x64xf32, #tpu.memory_space<vmem>>, vector<2x64xf32>
    %c0_1 = arith.constant 0 : index
    %c0_2 = arith.constant 0 : index
    %1 = vector.load %arg2[%c0_1, %c0_2] : memref<1x64xf32, #tpu.memory_space<vmem>>, vector<1x64xf32>
    %2 = vector.broadcast %1 : vector<1x64xf32> to vector<2x64xf32>
    %3 = arith.mulf %0, %2 : vector<2x64xf32>
    %c0_3 = arith.constant 0 : index
    %c0_4 = arith.constant 0 : index
    %4 = vector.load %arg4[%c0_3, %c0_4] : memref<2x64xf32, #tpu.memory_space<vmem>>, vector<2x64xf32>
    tpu.vector_store %arg4[%c0_3, %c0_4], %3 {strides = array<i32>} : memref<2x64xf32, #tpu.memory_space<vmem>>, vector<2x64xf32>,
    return
  }
  func.func @transform_0(%arg0: i32, %arg1: i32) -> (i32, i32) {
    %c0_i32 = arith.constant 0 : i32
    %c0_i32_0 = arith.constant 0 : i32
    return %c0_i32, %arg1 : i32, i32
  }
  func.func @transform_1(%arg0: i32, %arg1: i32) -> (i32, i32) {
    %c0_i32 = arith.constant 0 : i32
    return %arg0, %arg1 : i32, i32
  }
  func.func @transform_2(%arg0: i32, %arg1: i32) -> (i32, i32) {
    %c0_i32 = arith.constant 0 : i32
    return %arg0, %arg1 : i32, i32
  }
}

</mosaic_0001>

<bundles_post_ra>
// kernel: tpu_custom_call.1
= control target key start
LH: loop header
LB: loop body
LE: loop exit
PB: predicated region body
PF: predicated region fallthrough
CT: control target
= control target key end

     0   :  { %7 = vsyncpa [#allocation3], 0  ;;  %s175_s0 = inlined_call_operand.hbm [shape: f32[1,64], index: 0, kind: input, shape index: {}]   ;;  %s176_s1 = inlined_call_operand.hbm [shape: f32[2,64], index: 1, kind: input, shape index: {}]   ;;  %s177_s2 = inlined_call_operand.hbm [shape: f32[2,64], index: 2, kind: output, shape index: {}]  }
   0x1   :  { %8 = vsyncpa [#allocation6], 0 }
   0x2   :  { %9 = vsyncpa [#allocation4], 0  ;;  %s15_s11 = sshll.u32 %s175_s0, 4  ;;  %s148_s12 = smov [#allocation2]   ;;  %s16_s11 = int_to_ptr.hbm [resolvable:$true] %s15_s11 }
   0x3   :  { %s17_s13 = sshll.u32 %s148_s12, 4  ;;  %s26_s16 = sshll.u32 %s176_s1, 4  ;;  %s18_s13 = int_to_ptr.vmem [resolvable:$true] %s17_s13  ;;  %s27_s16 = int_to_ptr.hbm [resolvable:$true] %s26_s16 }
   0x4   :  { %20 = dma.hbm_to_vmem [thread:$0]  %s16_s11, 16, %s18_s13, [#allocation3]  }
   0x5   :  { %s149_s17 = smov [#allocation5]  }
   0x6   :  { %s28_s18 = sshll.u32 %s149_s17, 4  ;;  %s29_s18 = int_to_ptr.vmem [resolvable:$true] %s28_s18 }
   0x7   :  { %31 = dma.hbm_to_vmem [thread:$0]  %s27_s16, 32, %s29_s18, [#allocation6]  }
   0x8   :  { %142 = dma.done.wait [#allocation3], 16  }
   0x9   :  { %143 = vsyncadd [#allocation3], 4294967280 }
   0xa   :  { %144 = dma.done.wait [#allocation6], 32  }
   0xb   :  { %145 = vsyncadd [#allocation6], 4294967264  ;;  %s150_s19 = smov [#allocation7]   ;;  %s55_s22 = sshll.u32 %s177_s2, 4  ;;  %v40_v0 = vld [vmem:[#allocation5] sm:$0x3]  ;;  %s56_s22 = int_to_ptr.hbm [resolvable:$true] %s55_s22 }
   0xc   :  { %s53_s0 = sshll.u32 %s150_s19, 4  ;;  %v69_v1 = vld [vmem:[#allocation2] ss:$0 sm:$0xff]  ;;  %vm46_vm0 = vcmask 517120   ;;  %s54_s0 = int_to_ptr.vmem [resolvable:$true] %s53_s0 }
   0xd   :  { %v45_v2 = vmul.f32 %v69_v1, %v40_v0 }
   0xf   :  { %47 = vst.msk [vmem:[#allocation7] sm:$0x3] %vm46_vm0, %v45_v2 }
  0x10   :  { %58 = dma.vmem_to_hbm [thread:$0]  %s54_s0, 32, %s56_s22, [#allocation4]  }
  0x11   :  { %146 = dma.done.wait [#allocation4], 32  }
  0x12   :  { %147 = vsyncadd [#allocation4], 4294967264 }
  0x13   :  { %63 = vsyncpa [#allocation3], 1 }
  0x14   :  { %64 = vsyncpa [#allocation6], 1 }
  0x15   :  { %65 = vsyncpa [#allocation4], 1 }

</bundles_post_ra>
